<compile_context>
chip_gen: v6e
topology: v6e:2x2x1
jax: 0.10.0
libtpu: 0.0.40
codegen_flags: <defaults>
</compile_context>

<pallas_src>
import jax
import jax.numpy as jnp
import numpy as np
from jax import lax
from jax.experimental import pallas as pl
from jax.experimental.pallas import tpu as pltpu


def _round_up(v, m):
    return (v + m - 1) // m * m


def _linear_kernel(x_ref, w_ref, b_ref, o_ref, acc_ref):
    """One (tm, tn) output tile; grid axis 2 walks the K reduction.

    x_ref : (tm, tk)   activation tile (lane dim = K)
    w_ref : (tn, tk)   weight tile in native (N, K) layout (lane dim = K)
    b_ref : (1, tn)    bias tile (already f32)
    o_ref : (tm, tn)   output tile
    acc_ref: (tm, tn)  f32 VMEM accumulator, resident across K steps
    """
    @pl.when(pl.program_id(2) == 0)
    def _():
        acc_ref[...] = jnp.zeros_like(acc_ref)

    # y_tile += x_tile @ w_tile^T : contract the shared K (lane) dim on the MXU.
    acc_ref[...] += lax.dot_general(
        x_ref[...], w_ref[...],
        dimension_numbers=(((1,), (1,)), ((), ())),
        preferred_element_type=jnp.float32)

    @pl.when(pl.program_id(2) == pl.num_programs(2) - 1)
    def _():
        o_ref[...] = (acc_ref[...] + b_ref[...]).astype(o_ref.dtype)


def _vmem_limit_bytes():
    # v5e / v6e: 128 MiB physical VMEM -> raise the scoped limit.
    # v7x (and unknown chips): 64 MiB physical per TensorCore -> stay <= ~48 MiB.
    try:
        kind = jax.devices()[0].device_kind.lower()
    except Exception:
        kind = ""
    if "v5" in kind or "v6" in kind:
        return 96 * 1024 * 1024
    return 48 * 1024 * 1024


def _pick_tiles(M, N, K, itemsize):
    # Sublane packing per dtype: f32 -> 8 rows / vreg, bf16 -> 16, int8/fp8 -> 32.
    sub = {4: 8, 2: 16, 1: 32}.get(itemsize, 8)

    # M tile: full extent when small (legal full-dim block), else a big
    # sublane-aligned tile. Ragged tails are handled by Pallas write masking.
    tm = M if M <= 512 else 512

    # N tile: small N stays full extent (masked store << 2x weight DMA of
    # padding); large N uses a 128-multiple tile for lane-dense stores.
    tn = N if N <= 512 else 512

    # K tile: full K when it fits (single reduction step, no padding),
    # otherwise the largest 128-multiple divisor (falls back to 512 + pad).
    if K <= 1024:
        tk = K
    else:
        for cand in (1024, 512, 256, 128):
            if K % cand == 0:
                tk = cand
                break
        else:
            tk = 512  # wrapper zero-pads K up to a 512 multiple (rare)

    # v7x megacore: if both parallel axes collapse to a single block on a
    # non-trivial problem, split one so both TensorCores get work.
    if -(-M // tm) == 1 and -(-N // tn) == 1:
        if N >= 256:
            tn = _round_up(-(-N // 2), 128)
        elif M >= 64:
            tm = _round_up(-(-M // 2), sub)

    return tm, tn, tk


def lora_compatible_linear_forward(x, weight, bias):
    """TritonLoRACompatibleLinear.forward == wrapped nn.Linear: y = x @ W^T + b.

    x: (..., in_features), weight: (out_features, in_features), bias: (out_features,)
    """
    *lead, K = x.shape
    N, K_w = weight.shape
    assert K == K_w, "in_features mismatch"

    x2 = x.reshape(-1, K)          # collapsing leading dims is a free reshape
    M = x2.shape[0]

    itemsize = jnp.dtype(x.dtype).itemsize
    tm, tn, tk = _pick_tiles(M, N, K, itemsize)

    # Only K ever needs zero-padding (a ragged K block would corrupt the
    # reduction); ragged M / N tail blocks are masked by Pallas on store.
    if K % tk != 0:
        Kp = _round_up(K, tk)
        x2 = jnp.pad(x2, ((0, 0), (0, Kp - K)))
        weight = jnp.pad(weight, ((0, 0), (0, Kp - K)))
    else:
        Kp = K

    b2 = bias.astype(jnp.float32).reshape(1, N)

    grid = (pl.cdiv(M, tm), pl.cdiv(N, tn), Kp // tk)

    cost = pl.CostEstimate(
        flops=2 * M * N * K,
        transcendentals=0,
        bytes_accessed=(M * Kp + N * Kp) * itemsize + N * 4 + M * N * itemsize,
    )

    out = pl.pallas_call(
        _linear_kernel,
        out_shape=jax.ShapeDtypeStruct((M, N), x.dtype),
        grid_spec=pltpu.PrefetchScalarGridSpec(
            num_scalar_prefetch=0,
            grid=grid,
            in_specs=[
                pl.BlockSpec((tm, tk), lambda i, j, k: (i, k)),   # x  (M, K)
                pl.BlockSpec((tn, tk), lambda i, j, k: (j, k)),   # W  native (N, K)
                pl.BlockSpec((1, tn), lambda i, j, k: (0, j)),    # bias (1, N), f32
            ],
            out_specs=pl.BlockSpec((tm, tn), lambda i, j, k: (i, j)),
            scratch_shapes=[pltpu.VMEM((tm, tn), jnp.float32)],
        ),
        compiler_params=pltpu.CompilerParams(
            # M/N tiles are independent -> shard across TensorCores; K carries
            # the accumulator, so it is the "arbitrary" (sequential) axis.
            dimension_semantics=("parallel", "parallel", "arbitrary"),
            vmem_limit_bytes=_vmem_limit_bytes(),
        ),
        cost_estimate=cost,
    )(x2, weight, b2)

    return out.reshape(*lead, N)


if __name__ == "__main__":
    key = jax.random.PRNGKey(0)
    kx, kw, kb = jax.random.split(key, 3)

    # Small shapes consistent with a wrapped nn.Linear(32 -> 64)
    B, S, IN_F, OUT_F = 2, 8, 32, 64
    x = jax.random.normal(kx, (B, S, IN_F), dtype=jnp.float32)

    # Deterministic, nn.Linear-like parameter init
    bound = 1.0 / np.sqrt(IN_F)
    weight = jax.random.uniform(kw, (OUT_F, IN_F),
                                minval=-bound, maxval=bound, dtype=jnp.float32)
    bias = jax.random.uniform(kb, (OUT_F,),
                              minval=-bound, maxval=bound, dtype=jnp.float32)

    out = lora_compatible_linear_forward(x, weight, bias)
    out = jax.block_until_ready(out)

    # Reference: y = x @ W^T + b (same semantics as torch nn.Linear forward)
    ref = jnp.einsum('bsk,nk->bsn', x, weight) + bias
    np.testing.assert_allclose(np.asarray(out), np.asarray(ref),
                               rtol=1e-5, atol=1e-5)

    print("KERNEL_OK")
</pallas_src>

<mosaic_0001>
module attributes {stable_mosaic.version = 11 : i64} {
  func.func @_linear_kernel(%arg0: i32, %arg1: i32, %arg2: i32, %arg3: memref<16x32xf32, #tpu.memory_space<vmem>>, %arg4: memref<64x32xf32, #tpu.memory_space<vmem>>, %arg5: memref<1x64xf32, #tpu.memory_space<vmem>>, %arg6: memref<16x64xf32, #tpu.memory_space<vmem>>, %arg7: memref<16x64xf32, #tpu.memory_space<vmem>>) attributes {dimension_semantics = [#tpu.dimension_semantics<parallel>, #tpu.dimension_semantics<parallel>, #tpu.dimension_semantics<arbitrary>], iteration_bounds = array<i64: 1, 1, 1>, scalar_prefetch = 0 : i64, scratch_operands = 1 : i64, tpu.core_type = #tpu.core_type<tc>, window_params = [{transform_indices = @transform_0, window_bounds = array<i64: 16, 32>}, {transform_indices = @transform_1, window_bounds = array<i64: 64, 32>}, {transform_indices = @transform_2, window_bounds = array<i64: 1, 64>}, {transform_indices = @transform_3, window_bounds = array<i64: 16, 64>}]} {
    %c0_i32 = arith.constant 0 : i32
    %0 = arith.cmpi eq, %arg2, %c0_i32 : i32
    %1 = arith.extui %0 : i1 to i32
    %c0_i32_0 = arith.constant 0 : i32
    %2 = arith.cmpi ne, %1, %c0_i32_0 : i32
    scf.if %2 {
      %cst_10 = arith.constant 0.000000e+00 : f32
      %12 = vector.broadcast %cst_10 : f32 to vector<16x64xf32>
      %c0_11 = arith.constant 0 : index
      %c0_12 = arith.constant 0 : index
      %13 = vector.load %arg7[%c0_11, %c0_12] : memref<16x64xf32, #tpu.memory_space<vmem>>, vector<16x64xf32>
      tpu.vector_store %arg7[%c0_11, %c0_12], %12 {strides = array<i32>} : memref<16x64xf32, #tpu.memory_space<vmem>>, vector<16x64xf32>,
    } else {
    }
    %c0 = arith.constant 0 : index
    %c0_1 = arith.constant 0 : index
    %3 = vector.load %arg7[%c0, %c0_1] : memref<16x64xf32, #tpu.memory_space<vmem>>, vector<16x64xf32>
    %c0_2 = arith.constant 0 : index
    %c0_3 = arith.constant 0 : index
    %4 = vector.load %arg3[%c0_2, %c0_3] : memref<16x32xf32, #tpu.memory_space<vmem>>, vector<16x32xf32>
    %c0_4 = arith.constant 0 : index
    %c0_5 = arith.constant 0 : index
    %5 = vector.load %arg4[%c0_4, %c0_5] : memref<64x32xf32, #tpu.memory_space<vmem>>, vector<64x32xf32>
    %cst = arith.constant dense<0.000000e+00> : vector<16x64xf32>
    %6 = tpu.matmul %4, %5, %cst {dimension_numbers = #tpu.dot_dimension_numbers<[1], [1], [0], [0], [0, 0, 1, 0], [], []>} : vector<16x32xf32>, vector<64x32xf32>, vector<16x64xf32> -> vector<16x64xf32>
    %7 = arith.addf %3, %6 : vector<16x64xf32>
    %c0_6 = arith.constant 0 : index
    %c0_7 = arith.constant 0 : index
    %8 = vector.load %arg7[%c0_6, %c0_7] : memref<16x64xf32, #tpu.memory_space<vmem>>, vector<16x64xf32>
    tpu.vector_store %arg7[%c0_6, %c0_7], %7 {strides = array<i32>} : memref<16x64xf32, #tpu.memory_space<vmem>>, vector<16x64xf32>,
    %c0_i32_8 = arith.constant 0 : i32
    %9 = arith.cmpi eq, %arg2, %c0_i32_8 : i32
    %10 = arith.extui %9 : i1 to i32
    %c0_i32_9 = arith.constant 0 : i32
    %11 = arith.cmpi ne, %10, %c0_i32_9 : i32
    scf.if %11 {
      %c0_10 = arith.constant 0 : index
      %c0_11 = arith.constant 0 : index
      %12 = vector.load %arg7[%c0_10, %c0_11] : memref<16x64xf32, #tpu.memory_space<vmem>>, vector<16x64xf32>
      %c0_12 = arith.constant 0 : index
      %c0_13 = arith.constant 0 : index
      %13 = vector.load %arg5[%c0_12, %c0_13] : memref<1x64xf32, #tpu.memory_space<vmem>>, vector<1x64xf32>
      %14 = vector.broadcast %13 : vector<1x64xf32> to vector<16x64xf32>
      %15 = arith.addf %12, %14 : vector<16x64xf32>
      %c0_14 = arith.constant 0 : index
      %c0_15 = arith.constant 0 : index
      %16 = vector.load %arg6[%c0_14, %c0_15] : memref<16x64xf32, #tpu.memory_space<vmem>>, vector<16x64xf32>
      tpu.vector_store %arg6[%c0_14, %c0_15], %15 {strides = array<i32>} : memref<16x64xf32, #tpu.memory_space<vmem>>, vector<16x64xf32>,
    } else {
    }
    return
  }
  func.func @transform_0(%arg0: i32, %arg1: i32, %arg2: i32) -> (i32, i32) {
    %c0_i32 = arith.constant 0 : i32
    return %arg0, %arg2 : i32, i32
  }
  func.func @transform_1(%arg0: i32, %arg1: i32, %arg2: i32) -> (i32, i32) {
    %c0_i32 = arith.constant 0 : i32
    return %arg1, %arg2 : i32, i32
  }
  func.func @transform_2(%arg0: i32, %arg1: i32, %arg2: i32) -> (i32, i32) {
    %c0_i32 = arith.constant 0 : i32
    %c0_i32_0 = arith.constant 0 : i32
    return %c0_i32, %arg1 : i32, i32
  }
  func.func @transform_3(%arg0: i32, %arg1: i32, %arg2: i32) -> (i32, i32) {
    %c0_i32 = arith.constant 0 : i32
    return %arg0, %arg1 : i32, i32
  }
}

</mosaic_0001>

<bundles_post_ra>
// kernel: tpu_custom_call.1
= control target key start
LH: loop header
LB: loop body
LE: loop exit
PB: predicated region body
PF: predicated region fallthrough
CT: control target
= control target key end

     0   :  { %vm34_vm0 = vcmask 261120   ;;  %vm19_vm1 = vcmask 523264   ;;  %v243_v2 = vmov 0.0   ;;  %s327_s0 = inlined_call_operand.vmem [shape: f32[16,32], index: 0, kind: input, shape index: {}]   ;;  %s328_s1 = inlined_call_operand.vmem [shape: f32[64,32], index: 1, kind: input, shape index: {}]   ;;  %s329_s2 = inlined_call_operand.vmem [shape: f32[1,64], index: 2, kind: input, shape index: {}]   ;;  %s330_s3 = inlined_call_operand.hbm [shape: f32[16,64], index: 3, kind: output, shape index: {}]  }
   0x1   :  { %v33_v0 = vld [vmem:[%s328_s1 + $0x38] sm:$0xff]  ;;  %v32_v1 = vld [vmem:[%s328_s1 + $0x30] sm:$0xff]  ;;  %21 = vst.msk [vmem:[#allocation2 + $0x8] sm:$0xff] %vm19_vm1, %v243_v2  ;;  %20 = vst.msk [vmem:[#allocation2] sm:$0xff] %vm19_vm1, %v243_v2 }
   0x2   :  { %198 = vmatprep.subr.msk.mxu0 %vm34_vm0, %v33_v0  ;;  %v24_v3 = vld [vmem:[%s327_s0] sm:$0xff] }
   0x3   :  { %199 = vmatpush3.xpose.msk.msra.mxu0 %vm34_vm0, %v33_v0  ;;  %214 = vmatprep.mubr.msk.f32.mxu0 %vm34_vm0, %v24_v3 }
   0x4   :  { %200 = vmatprep.subr.msk.mxu0 %vm34_vm0, %v32_v1 }
   0x5   :  { %8 = vsyncpa [#allocation4], 0  ;;  %v31_v4 = vld [vmem:[%s328_s1 + $0x28] sm:$0xff]  ;;  %v30_v5 = vld [vmem:[%s328_s1 + $0x20] sm:$0xff]  ;;  %s244_s6 = smov [#allocation3]  }
   0x6   :  { %v29_v6 = vld [vmem:[%s328_s1 + $0x18] sm:$0xff]  ;;  %v28_v7 = vld [vmem:[%s328_s1 + $0x10] sm:$0xff]  ;;  %v27_v8 = vld [vmem:[%s328_s1 + $0x8] sm:$0xff]  ;;  %s166_s7 = sshll.u32 %s244_s6, 4  ;;  %s167_s7 = int_to_ptr.vmem [resolvable:$true] %s166_s7 }
   0x7   :  { %201 = vmatpush3.xpose.msk.msra.mxu0 %vm34_vm0, %v32_v1  ;;  %v26_v9 = vld [vmem:[%s328_s1] sm:$0xff]  ;;  %v25_v10 = vld [vmem:[%s327_s0 + $0x8] sm:$0xff]  ;;  %s221_s0 = scalar_lea.vmem %s167_s7, 256  ;;  %p226_p1 = scmp.lt.s32.totalorder %s167_s7, %s167_s7 }
   0x8   :  { %202 = vmatprep.subr.msk.mxu0 %vm34_vm0, %v31_v4  ;;  %v23_v11 = vld [vmem:[#allocation2 + $0x8] sm:$0xff]  ;;  %v22_v13 = vld [vmem:[#allocation2] sm:$0xff]  ;;  %p222_p0 = scmp.ne.s32.totalorder %s167_s7, %s221_s0  ;;  %p227_p2 = scmp.lt.s32.totalorder %s221_s0, %s221_s0 }
   0x9   :  { %v187_v17 = vld [vmem:[%s329_s2] ss:$0 sm:$0xff] }
   0xa   :  { %p228_p3 = por %p227_p2, %p226_p1 }
   0xb   :  { %203 = vmatpush3.xpose.msk.msra.mxu0 %vm34_vm0, %v31_v4 }
   0xc   :  { %204 = vmatprep.subr.msk.mxu0 %vm34_vm0, %v30_v5  ;;  %p229_p4 = pnand %p228_p3, %p222_p0 }
   0xf   :  { %205 = vmatpush3.xpose.msk.msra.mxu0 %vm34_vm0, %v30_v5 }
  0x10   :  { %206 = vmatprep.subr.msk.mxu0 %vm34_vm0, %v29_v6 }
  0x13   :  { %207 = vmatpush3.xpose.msk.msra.mxu0 %vm34_vm0, %v29_v6 }
  0x14   :  { %208 = vmatprep.subr.msk.mxu0 %vm34_vm0, %v28_v7 }
  0x17   :  { %209 = vmatpush3.xpose.msk.msra.mxu0 %vm34_vm0, %v28_v7 }
  0x18   :  { %210 = vmatprep.subr.msk.mxu0 %vm34_vm0, %v27_v8 }
  0x1b   :  { %211 = vmatpush3.xpose.msk.msra.mxu0 %vm34_vm0, %v27_v8 }
  0x1c   :  { %212 = vmatprep.subr.msk.mxu0 %vm34_vm0, %v26_v9 }
  0x1f   :  { %213 = vmatpush3.xpose.msk.msra.mxu0 %vm34_vm0, %v26_v9 }
  0x22   :  { %215 = vmatmul.mubr.msk.f32.vlgmr.msra.gmra.mxu0 %vm34_vm0, %v25_v10 }
  0xe2   :  { %v216_v12 = vpop.f32.mrf.mxu0 }
  0xe3   :  { %v141_v14 = vadd.f32 %v216_v12, %v23_v11 }
  0xe4   :  { %v131_v15 = vpop.f32.mrf.mxu0 }
  0xe5   :  { %144 = vst.msk [vmem:[#allocation2 + $0x8] sm:$0xff] %vm19_vm1, %v141_v14  ;;  %v140_v16 = vadd.f32 %v131_v15, %v22_v13 }
  0xe7   :  { %143 = vst.msk [vmem:[#allocation2] sm:$0xff] %vm19_vm1, %v140_v16 }
  0xec   :  { %v149_v18 = vld [vmem:[#allocation2 + $0x8] sm:$0xff] }
  0xed   :  { %v158_v19 = vadd.f32 %v187_v17, %v149_v18 }
  0xee   :  { %v148_v20 = vld [vmem:[#allocation2] sm:$0xff] }
  0xef   :  { %v157_v21 = vadd.f32 %v187_v17, %v148_v20  ;;  %160 = vst.msk [vmem:[#allocation3 + $0x8] sm:$0xff] %vm19_vm1, %v158_v19 }
  0xf1   :  { %159 = vst.msk [vmem:[#allocation3] sm:$0xff] %vm19_vm1, %v157_v21 }
  0xf2   :  { %232 = shalt.err (!%p229_p4)
}
  0xf3   :  { %s245_s8 = smov 128   ;;  %s246_s2 = smov 8  }
  0xf4   :  { %172 = dma.vmem_to_hbm [thread:$0]  %s167_s7, 256, %s330_s3, [#allocation4], %s245_s8, %s245_s8, %s246_s2  }
  0xf5   :  { %241 = dma.done.wait [#allocation4], 256  }
  0xf6   :  { %242 = vsyncadd [#allocation4], 4294967040 }
  0xf7   :  { %176 = vsyncpa [#allocation4], 1 }

</bundles_post_ra>
